<compile_context>
chip_gen: v7x
topology: tpu7x:2x2x1
jax: 0.10.0
libtpu: 0.0.40
codegen_flags: <defaults>
</compile_context>

<pallas_src>
import jax
import jax.numpy as jnp
from jax.experimental import pallas as pl
from jax.experimental.pallas import tpu as pltpu


# ----------------------------------------------------------------------------
# Kernel 1: hoisted input projection  XW = x @ W_ih^T + b   (one big MXU matmul)
# ----------------------------------------------------------------------------
def input_proj_kernel(x_ref, wih_t_ref, b_ref, o_ref):
    """
    x_ref:     (R_blk, Din)  matmul dtype (bf16 / f32)
    wih_t_ref: (Din, 4H)     matmul dtype (resident)
    b_ref:     (1, 4H)       f32  (b_ih + b_hh), folded in once
    o_ref:     (R_blk, 4H)   bf16 (default) / f32
    """
    o_ref[...] = (
        jnp.dot(x_ref[...], wih_t_ref[...], preferred_element_type=jnp.float32)
        + b_ref[...]
    ).astype(o_ref.dtype)


# ----------------------------------------------------------------------------
# Kernel 2: LSTM recurrence (PyTorch gate order i, f, g, o)
# ----------------------------------------------------------------------------
def lstm_recurrence_kernel(xw_ref, whh_t_ref, y_ref, h_ref, c_ref):
    """
    Grid: (batch_chunks ["parallel"], time_chunks ["arbitrary"]).

    xw_ref:    (B_chunk, T_chunk, 4H)  bf16/f32, precomputed x@W_ih^T + bias (batch-first)
    whh_t_ref: (H, 4H)                 matmul dtype, merged recurrent weight (resident)
    y_ref:     (B_chunk, T_chunk, H)   f32, batch-first output block
    h_ref/c_ref: (B_chunk, H) f32 VMEM scratch; persists across the time-chunk axis.
    """
    t_idx = pl.program_id(1)
    t_chunk = xw_ref.shape[1]
    H = h_ref.shape[1]

    @pl.when(t_idx == 0)
    def _init():
        h_ref[...] = jnp.zeros_like(h_ref)
        c_ref[...] = jnp.zeros_like(c_ref)

    w = whh_t_ref[...]                  # (H, 4H), resident (constant index_map)
    mm_dtype = w.dtype
    h = h_ref[...]                      # f32 state
    c = c_ref[...]

    # T_chunk is small (<= ~16) -> bounded static unroll; the grid's "arbitrary"
    # time axis carries the rest of the sequence.
    for tt in range(t_chunk):
        gates = xw_ref[:, tt, :].astype(jnp.float32) + jnp.dot(
            h.astype(mm_dtype), w, preferred_element_type=jnp.float32)  # (B_chunk, 4H)
        i_g = jax.nn.sigmoid(gates[:, 0 * H:1 * H])
        f_g = jax.nn.sigmoid(gates[:, 1 * H:2 * H])
        g_g = jnp.tanh(gates[:, 2 * H:3 * H])
        o_g = jax.nn.sigmoid(gates[:, 3 * H:4 * H])
        c = f_g * c + i_g * g_g
        h = o_g * jnp.tanh(c)
        # Per-timestep store: bounds liveness to h/c/current gates (no jnp.stack).
        # NOTE: for H < 128 the last dim is below lane width (masked vst); real
        # workloads should keep H a multiple of 128 for lane-dense stores.
        y_ref[:, tt, :] = h.astype(y_ref.dtype)

    h_ref[...] = h
    c_ref[...] = c


# ----------------------------------------------------------------------------
# VMEM budget helper
# ----------------------------------------------------------------------------
def _vmem_limit_bytes():
    """Scoped-VMEM limit: ~half of physical VMEM (v7x=64MiB -> 32MiB, v6e/v5e=128MiB -> 64MiB)."""
    try:
        phys = int(pltpu.get_tpu_info().vmem_capacity_bytes)
    except Exception:
        phys = 64 * 1024 * 1024  # conservative default (v7x per-core VMEM)
    return int(min(max(phys // 2, 32 * 1024 * 1024), 100 * 1024 * 1024))


# ----------------------------------------------------------------------------
# Wrapper: mirrors LSTM.forward (optional even/odd fold, then nn.LSTM batch_first)
# ----------------------------------------------------------------------------
def lstm_module_forward(x, w_ih, w_hh, b_ih, b_hh, layer_num, *,
                        t_chunk=16, matmul_dtype=jnp.bfloat16):
    B, T, F = x.shape
    if layer_num != 0:
        T2 = T // 2
        # torch: cat((x[:, [0,2,...], :], x[:, [1,3,...], :]), dim=-1)
        # TODO(synk): for odd T the fold truncates to 2*(T//2) steps; torch would error.
        x = jnp.concatenate([x[:, 0:2 * T2:2, :], x[:, 1:2 * T2:2, :]], axis=-1)

    B, Tp, Din = x.shape
    H = w_hh.shape[1]
    G = 4 * H
    xw_dtype = matmul_dtype                       # bf16 XW halves the dominant HBM traffic
    mm_bytes = jnp.dtype(matmul_dtype).itemsize
    xw_bytes = jnp.dtype(xw_dtype).itemsize
    vmem_limit = _vmem_limit_bytes()

    # ---- batch / time chunking for the recurrence ---------------------------
    # Two batch blocks when possible: the "parallel" batch axis can then shard
    # across v7x's 2 TensorCores, while tiles stay large for v5e/v6e (1 TC).
    b_chunk = B // 2 if (B % 16 == 0) else B

    # Time chunk = bounded static unroll; the time axis of the (b, t, lanes)
    # blocks is the sublane axis, so it must be a multiple of 8 unless it equals
    # the full (padded) time extent.  Shrink to fit the VMEM budget.
    if Tp <= t_chunk:
        t_chunk = Tp
    else:
        t_chunk = max(8, (int(t_chunk) // 8) * 8)
        resident = H * G * mm_bytes + 2 * b_chunk * H * 4
        budget = int(0.6 * vmem_limit) - resident
        while t_chunk > 8 and 2 * b_chunk * t_chunk * (G * xw_bytes + H * 4) > budget:
            t_chunk -= 8

    # Pad time up to a multiple of t_chunk (padded steps run AFTER the real ones,
    # so they never pollute real outputs; they are sliced off at the end).
    Tp_pad = ((Tp + t_chunk - 1) // t_chunk) * t_chunk
    if Tp_pad != Tp:
        x = jnp.pad(x, ((0, 0), (0, Tp_pad - Tp), (0, 0)))

    # ---- kernel 1: hoisted input projection (batch-major rows, no transposes) ----
    x2d = x.reshape(B * Tp_pad, Din).astype(matmul_dtype)        # (B*T'_pad, Din)
    wih_t = jnp.transpose(w_ih).astype(matmul_dtype)             # (Din, 4H)
    bias = (b_ih + b_hh).reshape(1, G).astype(jnp.float32)       # folded in once

    R = B * Tp_pad
    r_blk = min(512, R)
    while (r_blk >= 16 and r_blk % 8 == 0
           and 2 * r_blk * (Din * mm_bytes + G * xw_bytes) + Din * G * mm_bytes
               > int(0.8 * vmem_limit)):
        r_blk //= 2

    xw2d = pl.pallas_call(
        input_proj_kernel,
        out_shape=jax.ShapeDtypeStruct((R, G), xw_dtype),
        grid=(pl.cdiv(R, r_blk),),
        in_specs=[pl.BlockSpec((r_blk, Din), lambda i: (i, 0)),
                  pl.BlockSpec((Din, G), lambda i: (0, 0)),
                  pl.BlockSpec((1, G), lambda i: (0, 0))],
        out_specs=pl.BlockSpec((r_blk, G), lambda i: (i, 0)),
        compiler_params=pltpu.CompilerParams(
            dimension_semantics=("parallel",),
            vmem_limit_bytes=vmem_limit),
    )(x2d, wih_t, bias)
    xw = xw2d.reshape(B, Tp_pad, G)                              # (B, T'_pad, 4H)

    # ---- kernel 2: recurrence (batch-first output, carried h/c state) -----------
    whh_t = jnp.transpose(w_hh).astype(matmul_dtype)             # (H, 4H) merged

    grid = (B // b_chunk, Tp_pad // t_chunk)
    y = pl.pallas_call(
        lstm_recurrence_kernel,
        out_shape=jax.ShapeDtypeStruct((B, Tp_pad, H), jnp.float32),
        grid=grid,
        in_specs=[pl.BlockSpec((b_chunk, t_chunk, G), lambda b, t: (b, t, 0)),
                  pl.BlockSpec((H, G), lambda b, t: (0, 0))],
        out_specs=pl.BlockSpec((b_chunk, t_chunk, H), lambda b, t: (b, t, 0)),
        scratch_shapes=[pltpu.VMEM((b_chunk, H), jnp.float32),   # h state
                        pltpu.VMEM((b_chunk, H), jnp.float32)],  # c state
        compiler_params=pltpu.CompilerParams(
            dimension_semantics=("parallel", "arbitrary"),
            vmem_limit_bytes=vmem_limit),
    )(xw, whh_t)

    if Tp_pad != Tp:
        y = y[:, :Tp, :]
    return y                                                     # (B, T', H) batch-first


# ----------------------------------------------------------------------------
# Pure-JAX reference (same math as torch.nn.LSTM) for correctness check
# ----------------------------------------------------------------------------
def _reference_lstm(x, w_ih, w_hh, b_ih, b_hh, layer_num):
    B, T, F = x.shape
    if layer_num != 0:
        T2 = T // 2
        x = jnp.concatenate([x[:, 0:2 * T2:2, :], x[:, 1:2 * T2:2, :]], axis=-1)
    H = w_hh.shape[1]
    h = jnp.zeros((B, H), jnp.float32)
    c = jnp.zeros((B, H), jnp.float32)
    ys = []
    for t in range(x.shape[1]):
        gates = x[:, t, :] @ w_ih.T + h @ w_hh.T + b_ih + b_hh
        i = jax.nn.sigmoid(gates[:, 0 * H:1 * H])
        f = jax.nn.sigmoid(gates[:, 1 * H:2 * H])
        g = jnp.tanh(gates[:, 2 * H:3 * H])
        o = jax.nn.sigmoid(gates[:, 3 * H:4 * H])
        c = f * c + i * g
        h = o * jnp.tanh(c)
        ys.append(h)
    return jnp.stack(ys, axis=1)


if __name__ == "__main__":
    # Module config: LSTM(nDimInput=32, nDimOutput=32, nCountLayer=1)
    # With layer_num != 0 the raw input has F = nDimInput // 2 features.
    B, T, F = 2, 32, 16
    D_IN = 2 * F      # 32 (feature dim after even/odd fold)
    H = 32            # nDimOutput
    LAYER_NUM = 1

    key = jax.random.PRNGKey(0)
    kx, k1, k2, k3, k4, k5 = jax.random.split(key, 6)

    x = jax.random.normal(kx, (B, T, F), dtype=jnp.float32)

    # PyTorch default init: U(-1/sqrt(H), 1/sqrt(H)).
    bound = 1.0 / jnp.sqrt(jnp.float32(H))
    w_ih = jax.random.uniform(k1, (4 * H, D_IN), jnp.float32, -bound, bound)
    w_hh = jax.random.uniform(k2, (4 * H, H), jnp.float32, -bound, bound)
    b_ih = jax.random.uniform(k3, (4 * H,), jnp.float32, -bound, bound)
    b_hh = jax.random.uniform(k4, (4 * H,), jnp.float32, -bound, bound)

    y_ref = _reference_lstm(x, w_ih, w_hh, b_ih, b_hh, LAYER_NUM)

    # 1) f32 matmul path, t_chunk=8 -> 2 time chunks: strict check of the h/c carry
    #    across the "arbitrary" time-chunk grid axis.
    y32 = lstm_module_forward(x, w_ih, w_hh, b_ih, b_hh, LAYER_NUM,
                              t_chunk=8, matmul_dtype=jnp.float32)
    y32 = jax.block_until_ready(y32)
    assert y32.shape == (B, T // 2, H), y32.shape
    assert float(jnp.max(jnp.abs(y32 - y_ref))) < 1e-3, float(jnp.max(jnp.abs(y32 - y_ref)))

    # 2) bf16 matmul + bf16 XW (default perf config).
    y16 = lstm_module_forward(x, w_ih, w_hh, b_ih, b_hh, LAYER_NUM)
    y16 = jax.block_until_ready(y16)
    assert y16.shape == (B, T // 2, H), y16.shape
    assert float(jnp.max(jnp.abs(y16 - y_ref))) < 5e-2, float(jnp.max(jnp.abs(y16 - y_ref)))

    # 3) Padded-time path: T=30 -> T'=15, t_chunk=8 -> padded to 16, tail sliced off.
    x30 = x[:, :30, :]
    y_ref30 = _reference_lstm(x30, w_ih, w_hh, b_ih, b_hh, LAYER_NUM)
    y30 = lstm_module_forward(x30, w_ih, w_hh, b_ih, b_hh, LAYER_NUM, t_chunk=8)
    y30 = jax.block_until_ready(y30)
    assert y30.shape == (B, 15, H), y30.shape
    assert float(jnp.max(jnp.abs(y30 - y_ref30))) < 5e-2, float(jnp.max(jnp.abs(y30 - y_ref30)))

    # 4) layer_num == 0 path (no even/odd fold): Din = F.
    w_ih0 = jax.random.uniform(k5, (4 * H, F), jnp.float32, -bound, bound)
    y_ref0 = _reference_lstm(x, w_ih0, w_hh, b_ih, b_hh, 0)
    y0 = lstm_module_forward(x, w_ih0, w_hh, b_ih, b_hh, 0, t_chunk=8)
    y0 = jax.block_until_ready(y0)
    assert y0.shape == (B, T, H), y0.shape
    assert float(jnp.max(jnp.abs(y0 - y_ref0))) < 5e-2, float(jnp.max(jnp.abs(y0 - y_ref0)))

    print("KERNEL_OK")
</pallas_src>

<mosaic_0001>
module attributes {stable_mosaic.version = 11 : i64} {
  func.func @input_proj_kernel(%arg0: i32, %arg1: memref<32x32xf32, #tpu.memory_space<vmem>>, %arg2: memref<32x128xf32, #tpu.memory_space<vmem>>, %arg3: memref<1x128xf32, #tpu.memory_space<vmem>>, %arg4: memref<32x128xf32, #tpu.memory_space<vmem>>) attributes {dimension_semantics = [#tpu.dimension_semantics<parallel>], iteration_bounds = array<i64: 1>, scalar_prefetch = 0 : i64, scratch_operands = 0 : i64, tpu.core_type = #tpu.core_type<tc>, window_params = [{transform_indices = @transform_0, window_bounds = array<i64: 32, 32>}, {pipeline_mode = #tpu.pipeline_mode<synchronous>, transform_indices = @transform_1, window_bounds = array<i64: 32, 128>}, {pipeline_mode = #tpu.pipeline_mode<synchronous>, transform_indices = @transform_2, window_bounds = array<i64: 1, 128>}, {transform_indices = @transform_3, window_bounds = array<i64: 32, 128>}]} {
    %c0 = arith.constant 0 : index
    %c0_0 = arith.constant 0 : index
    %0 = vector.load %arg1[%c0, %c0_0] : memref<32x32xf32, #tpu.memory_space<vmem>>, vector<32x32xf32>
    %c0_1 = arith.constant 0 : index
    %c0_2 = arith.constant 0 : index
    %1 = vector.load %arg2[%c0_1, %c0_2] : memref<32x128xf32, #tpu.memory_space<vmem>>, vector<32x128xf32>
    %cst = arith.constant dense<0.000000e+00> : vector<32x128xf32>
    %2 = tpu.matmul %0, %1, %cst {dimension_numbers = #tpu.dot_dimension_numbers<[1], [0], [0], [1], [0, 0, 1, 1], [], []>} : vector<32x32xf32>, vector<32x128xf32>, vector<32x128xf32> -> vector<32x128xf32>
    %c0_3 = arith.constant 0 : index
    %c0_4 = arith.constant 0 : index
    %3 = vector.load %arg3[%c0_3, %c0_4] : memref<1x128xf32, #tpu.memory_space<vmem>>, vector<1x128xf32>
    %4 = vector.broadcast %3 : vector<1x128xf32> to vector<32x128xf32>
    %5 = arith.addf %2, %4 : vector<32x128xf32>
    %c0_5 = arith.constant 0 : index
    %c0_6 = arith.constant 0 : index
    %6 = vector.load %arg4[%c0_5, %c0_6] : memref<32x128xf32, #tpu.memory_space<vmem>>, vector<32x128xf32>
    tpu.vector_store %arg4[%c0_5, %c0_6], %5 {strides = array<i32>} : memref<32x128xf32, #tpu.memory_space<vmem>>, vector<32x128xf32>,
    return
  }
  func.func @transform_0(%arg0: i32) -> (i32, i32) {
    %c0_i32 = arith.constant 0 : i32
    %c0_i32_0 = arith.constant 0 : i32
    return %arg0, %c0_i32 : i32, i32
  }
  func.func @transform_1(%arg0: i32) -> (i32, i32) {
    %c0_i32 = arith.constant 0 : i32
    %c0_i32_0 = arith.constant 0 : i32
    %c0_i32_1 = arith.constant 0 : i32
    return %c0_i32, %c0_i32_0 : i32, i32
  }
  func.func @transform_2(%arg0: i32) -> (i32, i32) {
    %c0_i32 = arith.constant 0 : i32
    %c0_i32_0 = arith.constant 0 : i32
    %c0_i32_1 = arith.constant 0 : i32
    return %c0_i32, %c0_i32_0 : i32, i32
  }
  func.func @transform_3(%arg0: i32) -> (i32, i32) {
    %c0_i32 = arith.constant 0 : i32
    %c0_i32_0 = arith.constant 0 : i32
    return %arg0, %c0_i32 : i32, i32
  }
}

</mosaic_0001>

<bundles_post_ra>
// kernel: tpu_custom_call.1
= control target key start
LH: loop header
LB: loop body
LE: loop exit
PB: predicated region body
PF: predicated region fallthrough
CT: control target
= control target key end

     0   :  { %8 = vsyncpa [#allocation3], 0  ;;  %s371_s0 = inlined_call_operand.hbm [shape: f32[32,32], index: 0, kind: input, shape index: {}]   ;;  %s372_s1 = inlined_call_operand.hbm [shape: f32[32,128], index: 1, kind: input, shape index: {}]   ;;  %s373_s2 = inlined_call_operand.vmem [shape: f32[1,128], index: 2, kind: input, shape index: {}]   ;;  %s374_s3 = inlined_call_operand.hbm [shape: f32[32,128], index: 3, kind: output, shape index: {}]  }
   0x1   :  { %9 = vsyncpa [#allocation6], 0 }
   0x2   :  { %10 = vsyncpa [#allocation4], 0  ;;  %s294_s12 = smov [#allocation2]   ;;  %s222_s16 = scalar_lea.hbm %s371_s0, 512 }
   0x3   :  { %s16_s13 = sshll.u32 %s294_s12, 4  ;;  %p223_p0 = scmp.ne.s32.totalorder %s371_s0, %s222_s16  ;;  %s17_s13 = int_to_ptr.vmem [resolvable:$true] %s16_s13 }
   0x4   :  { %p226_p1 = scmp.lt.u32.totalorder %s222_s16, %s371_s0 }
   0x6   :  { %p228_p2 = pnand %p226_p1, %p223_p0 }
   0x8   :  { %231 = shalt.err (!%p228_p2)
}
   0x9   :  { %s232_s21 = scalar_lea.vmem %s17_s13, 512  ;;  %p237_p4 = scmp.lt.s32.totalorder %s17_s13, %s17_s13 }
   0xa   :  { %p233_p3 = scmp.ne.s32.totalorder %s17_s13, %s232_s21  ;;  %p238_p5 = scmp.lt.s32.totalorder %s232_s21, %s232_s21 }
   0xc   :  { %p239_p6 = por %p238_p5, %p237_p4 }
   0xe   :  { %p240_p7 = pnand %p239_p6, %p233_p3 }
  0x10   :  { %243 = shalt.err (!%p240_p7)
}
  0x11   :  { %s295_s22 = smov 128   ;;  %s296_s23 = smov 8  }
  0x12   :  { %22 = dma.hbm_to_vmem [thread:$0]  %s371_s0, 512, %s17_s13, [#allocation3], %s295_s22, %s295_s22, %s296_s23  }
  0x13   :  { %s297_s26 = smov [#allocation5]   ;;  %s244_s30 = scalar_lea.hbm %s372_s1, 512 }
  0x14   :  { %s28_s27 = sshll.u32 %s297_s26, 4  ;;  %p245_p8 = scmp.ne.s32.totalorder %s372_s1, %s244_s30  ;;  %s29_s27 = int_to_ptr.vmem [resolvable:$true] %s28_s27 }
  0x15   :  { %p248_p9 = scmp.lt.u32.totalorder %s244_s30, %s372_s1 }
  0x17   :  { %p250_p10 = pnand %p248_p9, %p245_p8 }
  0x19   :  { %253 = shalt.err (!%p250_p10)
}
  0x1a   :  { %s254_s8 = scalar_lea.vmem %s29_s27, 512  ;;  %p259_p12 = scmp.lt.s32.totalorder %s29_s27, %s29_s27 }
  0x1b   :  { %p255_p11 = scmp.ne.s32.totalorder %s29_s27, %s254_s8  ;;  %p260_p13 = scmp.lt.s32.totalorder %s254_s8, %s254_s8 }
  0x1d   :  { %p261_p0 = por %p260_p13, %p259_p12 }
  0x1f   :  { %p262_p1 = pnand %p261_p0, %p255_p11 }
  0x21   :  { %265 = shalt.err (!%p262_p1)
}
  0x22   :  { %34 = dma.hbm_to_vmem [thread:$0]  %s372_s1, 512, %s29_s27, [#allocation6], %s295_s22, %s295_s22, %s296_s23  }
  0x23   :  { %288 = dma.done.wait [#allocation3], 512  }
  0x24   :  { %289 = vsyncadd [#allocation3], 4294966784 }
  0x25   :  { %290 = dma.done.wait [#allocation6], 512  }
  0x26   :  { %291 = vsyncadd [#allocation6], 4294966784  ;;  %vm58_vm0 = vcmask 261120   ;;  %v47_v0 = vld [vmem:[#allocation5] sm:$0xff]  ;;  %v48_v1 = vld [vmem:[#allocation5 + $0x8] sm:$0xff]  ;;  %s298_s11 = smov [#allocation7]  }
  0x27   :  { %v49_v2 = vld [vmem:[#allocation5 + $0x10] sm:$0xff]  ;;  %v205_v3 = vpack.c.bf16 %v48_v1, %v47_v0  ;;  %v50_v4 = vld [vmem:[#allocation5 + $0x18] sm:$0xff]  ;;  %v43_v5 = vld [vmem:[#allocation2] sm:$0xff]  ;;  %s165_s12 = sshll.u32 %s298_s11, 4  ;;  %s166_s12 = int_to_ptr.vmem [resolvable:$true] %s165_s12 }
  0x28   :  { %v45_v6 = vld [vmem:[#allocation2 + $0x10] sm:$0xff]  ;;  %v209_v7 = vpack.c.bf16 %v50_v4, %v49_v2  ;;  %199 = vmatprep.mubr.msk.f32.mxu0 %vm58_vm0, %v43_v5  ;;  %v44_v8 = vld [vmem:[#allocation2 + $0x8] sm:$0xff]  ;;  %v46_v9 = vld [vmem:[#allocation2 + $0x18] sm:$0xff]  ;;  %s266_s13 = scalar_lea.vmem %s166_s12, 512  ;;  %p271_p3 = scmp.lt.s32.totalorder %s166_s12, %s166_s12 }
  0x29   :  { %202 = vmatprep.mubr.msk.f32.mxu1 %vm58_vm0, %v45_v6  ;;  %206 = vmatprep.subr.bf16.mxu0 %v205_v3  ;;  %v178_v10 = vld [vmem:[%s373_s2] ss:$0 sm:$0xff]  ;;  %p267_p2 = scmp.ne.s32.totalorder %s166_s12, %s266_s13  ;;  %p272_p4 = scmp.lt.s32.totalorder %s266_s13, %s266_s13 }
  0x2a   :  { %213 = vmatprep.subr.bf16.mxu1 %v205_v3  ;;  %208 = vmatpush3.bf16.msra.mxu0 %v205_v3 }
  0x2b   :  { %215 = vmatpush3.bf16.msra.mxu1 %v205_v3  ;;  %210 = vmatprep.subr.bf16.mxu0 %v209_v7  ;;  %p273_p5 = por %p272_p4, %p271_p3 }
  0x2c   :  { %214 = vmatprep.subr.bf16.mxu1 %v209_v7 }
  0x2d   :  { %p274_p6 = pnand %p273_p5, %p267_p2 }
  0x2e   :  { %212 = vmatpush3.bf16.msra.mxu0 %v209_v7 }
  0x2f   :  { %216 = vmatpush3.bf16.msra.mxu1 %v209_v7 }
  0x31   :  { %200 = vmatmul.mubr.msk.f32.vlgmr.msra.gmra.mrb[0].mxu0 %vm58_vm0, %v44_v8 }
  0x32   :  { %203 = vmatmul.mubr.msk.f32.vlgmr.msra.gmra.mrb[0].mxu1 %vm58_vm0, %v46_v9 }
 0x104   :  { %v201_v11 = vpop.f32.mrb[0].mxu0 }
 0x105   :  { %v204_v12 = vpop.f32.mrb[0].mxu1  ;;  %v143_v13 = vadd.f32 %v201_v11, %v178_v10  ;;  %v137_v15 = vpop.f32.mrb[1].mxu0 }
 0x106   :  { %v153_v14 = vadd.f32 %v204_v12, %v178_v10  ;;  %v147_v16 = vpop.f32.mrb[1].mxu1  ;;  %v138_v17 = vadd.f32 %v178_v10, %v137_v15 }
 0x107   :  { %v148_v18 = vadd.f32 %v178_v10, %v147_v16  ;;  %157 = vst [vmem:[#allocation7 + $0x8] sm:$0xff] %v143_v13 }
 0x108   :  { %159 = vst [vmem:[#allocation7 + $0x18] sm:$0xff] %v153_v14  ;;  %156 = vst [vmem:[#allocation7] sm:$0xff] %v138_v17 }
 0x109   :  { %158 = vst [vmem:[#allocation7 + $0x10] sm:$0xff] %v148_v18 }
 0x10a   :  { %277 = shalt.err (!%p274_p6)
}
 0x10b   :  { %s278_s15 = scalar_lea.hbm %s374_s3, 512 }
 0x10c   :  { %p279_p7 = scmp.ne.s32.totalorder %s374_s3, %s278_s15  ;;  %p282_p8 = scmp.lt.u32.totalorder %s278_s15, %s374_s3 }
 0x10e   :  { %p284_p9 = pnand %p282_p8, %p279_p7 }
 0x110   :  { %287 = shalt.err (!%p284_p9)
}
 0x111   :  { %171 = dma.vmem_to_hbm [thread:$0]  %s166_s12, 512, %s374_s3, [#allocation4], %s295_s22, %s295_s22, %s296_s23  }
 0x112   :  { %292 = dma.done.wait [#allocation4], 512  }
 0x113   :  { %293 = vsyncadd [#allocation4], 4294966784 }
 0x114   :  { %175 = vsyncpa [#allocation3], 1 }
 0x115   :  { %176 = vsyncpa [#allocation6], 1 }
 0x116   :  { %177 = vsyncpa [#allocation4], 1 }

</bundles_post_ra>
